<compile_context>
chip_gen: v6e
topology: v6e:2x2x1
jax: 0.10.0
libtpu: 0.0.40
codegen_flags: <defaults>
</compile_context>

<pallas_src>
import jax
import jax.numpy as jnp
from jax.experimental import pallas as pl
from jax.experimental.pallas import tpu as pltpu


def _round_up(x, m):
    return ((x + m - 1) // m) * m


def _linear_kernel(x_ref, w_ref, b_ref, o_ref):
    # One row-tile of the projection: [TILE_M, K] @ [K, P] (MXU) + bias (VPU).
    o_ref[...] = (
        jnp.dot(x_ref[...], w_ref[...], preferred_element_type=jnp.float32)
        + b_ref[...]
    ).astype(o_ref.dtype)


def dist_angle_coords(xs, weight, bias, *, tile_m_max=1024):
    """Pallas implementation of DistAngleCoords.forward.

    xs:     [N, emb_dim]  float32
    weight: [3, emb_dim]  float32  (PyTorch Linear layout)
    bias:   [3]           float32
    returns [N, 3]        float32
    """
    N, D = xs.shape
    out_dim, d_w = weight.shape
    assert d_w == D, "weight must be [out_dim, emb_dim]"

    # Lane-density packing factor: fold `pack` rows into one 128-lane row.
    if D < 128 and 128 % D == 0:
        pack = 128 // D
    else:
        pack = 1
    K = pack * D          # contraction width seen by the kernel (128 for D=32)
    P = pack * out_dim    # packed output width (12 for D=32)

    # Packed-row count, padded so the grid tiles evenly.
    m_needed = -(-N // pack)  # ceil-div
    if m_needed <= tile_m_max:
        tile_m = max(8, _round_up(m_needed, 8))
        m_pad = tile_m
    else:
        tile_m = tile_m_max
        m_pad = _round_up(m_needed, tile_m)
    n_pad = m_pad * pack

    xs_p = xs
    if n_pad != N:
        xs_p = jnp.pad(xs, ((0, n_pad - N), (0, 0)))
    xs_p = xs_p.reshape(m_pad, K)  # contiguous: packed row r = rows r*pack..r*pack+pack-1

    # Block-diagonal packed weight (kron(I_pack, W^T)) and tiled bias, lane-dense.
    # In a real deployment this packing is done once, outside the hot loop.
    w_packed = jnp.kron(jnp.eye(pack, dtype=xs.dtype),
                        weight.T.astype(xs.dtype))                 # [K, P]
    b_packed = jnp.tile(bias.astype(xs.dtype), pack).reshape(1, P)  # [1, P]

    grid = (m_pad // tile_m,)
    cost = pl.CostEstimate(
        flops=2 * N * D * out_dim,
        transcendentals=0,
        bytes_accessed=4 * (N * D + D * out_dim + N * out_dim),
    )

    out_packed = pl.pallas_call(
        _linear_kernel,
        out_shape=jax.ShapeDtypeStruct((m_pad, P), xs.dtype),
        grid_spec=pltpu.PrefetchScalarGridSpec(
            num_scalar_prefetch=0,
            grid=grid,
            in_specs=[
                pl.BlockSpec((tile_m, K), lambda i: (i, 0)),  # row tiles stream (double-buffered)
                pl.BlockSpec((K, P), lambda i: (0, 0)),       # weight resident in VMEM
                pl.BlockSpec((1, P), lambda i: (0, 0)),       # bias resident in VMEM
            ],
            out_specs=pl.BlockSpec((tile_m, P), lambda i: (i, 0)),
        ),
        compiler_params=pltpu.CompilerParams(
            # Independent row tiles -> shard across both TensorCores on v7x.
            dimension_semantics=("parallel",),
        ),
        cost_estimate=cost,
    )(xs_p, w_packed, b_packed)

    # Row-major unpack [m_pad, pack*3] -> [n_pad, 3], then drop padding rows.
    return out_packed.reshape(n_pad, out_dim)[:N]


if __name__ == "__main__":
    key = jax.random.PRNGKey(0)
    k_x, k_w, k_b, k_x2 = jax.random.split(key, 4)

    emb_dim = 32
    out_dim = 3

    # torch.nn.Linear-style uniform init: U(-1/sqrt(emb_dim), 1/sqrt(emb_dim)).
    bound = 1.0 / jnp.sqrt(jnp.float32(emb_dim))
    weight = jax.random.uniform(k_w, (out_dim, emb_dim), dtype=jnp.float32,
                                minval=-bound, maxval=bound)
    bias = jax.random.uniform(k_b, (out_dim,), dtype=jnp.float32,
                              minval=-bound, maxval=bound)

    # Test 1: module-consistent small shape (seq=8, hidden=32).
    xs_small = jax.random.normal(k_x, (8, emb_dim), dtype=jnp.float32)
    out_small = dist_angle_coords(xs_small, weight, bias)
    jax.block_until_ready(out_small)
    ref_small = xs_small @ weight.T + bias
    assert out_small.shape == (8, out_dim)
    assert jnp.allclose(out_small, ref_small, atol=1e-5, rtol=1e-5)

    # Test 2: N not a multiple of pack or tile (exercises padding/slicing path).
    xs_big = jax.random.normal(k_x2, (1000, emb_dim), dtype=jnp.float32)
    out_big = dist_angle_coords(xs_big, weight, bias)
    jax.block_until_ready(out_big)
    ref_big = xs_big @ weight.T + bias
    assert out_big.shape == (1000, out_dim)
    assert jnp.allclose(out_big, ref_big, atol=1e-5, rtol=1e-5)

    print("KERNEL_OK")
</pallas_src>

<mosaic_0001>
module attributes {stable_mosaic.version = 11 : i64} {
  func.func @_linear_kernel(%arg0: i32, %arg1: memref<8x128xf32, #tpu.memory_space<vmem>>, %arg2: memref<128x12xf32, #tpu.memory_space<vmem>>, %arg3: memref<1x12xf32, #tpu.memory_space<vmem>>, %arg4: memref<8x12xf32, #tpu.memory_space<vmem>>) attributes {dimension_semantics = [#tpu.dimension_semantics<parallel>], iteration_bounds = array<i64: 1>, scalar_prefetch = 0 : i64, scratch_operands = 0 : i64, tpu.core_type = #tpu.core_type<tc>, window_params = [{transform_indices = @transform_0, window_bounds = array<i64: 8, 128>}, {pipeline_mode = #tpu.pipeline_mode<synchronous>, transform_indices = @transform_1, window_bounds = array<i64: 128, 12>}, {pipeline_mode = #tpu.pipeline_mode<synchronous>, transform_indices = @transform_2, window_bounds = array<i64: 1, 12>}, {transform_indices = @transform_3, window_bounds = array<i64: 8, 12>}]} {
    %c0 = arith.constant 0 : index
    %c0_0 = arith.constant 0 : index
    %0 = vector.load %arg1[%c0, %c0_0] : memref<8x128xf32, #tpu.memory_space<vmem>>, vector<8x128xf32>
    %c0_1 = arith.constant 0 : index
    %c0_2 = arith.constant 0 : index
    %1 = vector.load %arg2[%c0_1, %c0_2] : memref<128x12xf32, #tpu.memory_space<vmem>>, vector<128x12xf32>
    %cst = arith.constant dense<0.000000e+00> : vector<8x12xf32>
    %2 = tpu.matmul %0, %1, %cst {dimension_numbers = #tpu.dot_dimension_numbers<[1], [0], [0], [1], [0, 0, 1, 1], [], []>} : vector<8x128xf32>, vector<128x12xf32>, vector<8x12xf32> -> vector<8x12xf32>
    %c0_3 = arith.constant 0 : index
    %c0_4 = arith.constant 0 : index
    %3 = vector.load %arg3[%c0_3, %c0_4] : memref<1x12xf32, #tpu.memory_space<vmem>>, vector<1x12xf32>
    %4 = vector.broadcast %3 : vector<1x12xf32> to vector<8x12xf32>
    %5 = arith.addf %2, %4 : vector<8x12xf32>
    %c0_5 = arith.constant 0 : index
    %c0_6 = arith.constant 0 : index
    %6 = vector.load %arg4[%c0_5, %c0_6] : memref<8x12xf32, #tpu.memory_space<vmem>>, vector<8x12xf32>
    tpu.vector_store %arg4[%c0_5, %c0_6], %5 {strides = array<i32>} : memref<8x12xf32, #tpu.memory_space<vmem>>, vector<8x12xf32>,
    return
  }
  func.func @transform_0(%arg0: i32) -> (i32, i32) {
    %c0_i32 = arith.constant 0 : i32
    %c0_i32_0 = arith.constant 0 : i32
    return %arg0, %c0_i32 : i32, i32
  }
  func.func @transform_1(%arg0: i32) -> (i32, i32) {
    %c0_i32 = arith.constant 0 : i32
    %c0_i32_0 = arith.constant 0 : i32
    %c0_i32_1 = arith.constant 0 : i32
    return %c0_i32, %c0_i32_0 : i32, i32
  }
  func.func @transform_2(%arg0: i32) -> (i32, i32) {
    %c0_i32 = arith.constant 0 : i32
    %c0_i32_0 = arith.constant 0 : i32
    %c0_i32_1 = arith.constant 0 : i32
    return %c0_i32, %c0_i32_0 : i32, i32
  }
  func.func @transform_3(%arg0: i32) -> (i32, i32) {
    %c0_i32 = arith.constant 0 : i32
    %c0_i32_0 = arith.constant 0 : i32
    return %arg0, %c0_i32 : i32, i32
  }
}

</mosaic_0001>

<bundles_post_ra>
// kernel: tpu_custom_call.1
= control target key start
LH: loop header
LB: loop body
LE: loop exit
PB: predicated region body
PF: predicated region fallthrough
CT: control target
= control target key end

     0   :  { %v203_v1 = vmov 0.0   ;;  %vm204_vm0 = vmmov 0   ;;  %s283_s0 = inlined_call_operand.vmem [shape: f32[8,128], index: 0, kind: input, shape index: {}]   ;;  %s284_s1 = inlined_call_operand.vmem [shape: f32[128,12], index: 1, kind: input, shape index: {}]   ;;  %s285_s2 = inlined_call_operand.vmem [shape: f32[1,12], index: 2, kind: input, shape index: {}]   ;;  %s286_s3 = inlined_call_operand.hbm [shape: f32[8,12], index: 3, kind: output, shape index: {}]  }
   0x1   :  { %v31_v0 = vld [vmem:[%s284_s1 + $0x78] sm:$0xff]  ;;  %143 = vmatprep.subr.mxu0 %v203_v1  ;;  %v30_v2 = vld [vmem:[%s284_s1 + $0x70] sm:$0xff]  ;;  %175 = vmatprep.mubr.msk.f32.mxu0 %vm204_vm0, %v203_v1  ;;  %v29_v3 = vld [vmem:[%s284_s1 + $0x68] sm:$0xff] }
   0x2   :  { %144 = vmatpush3.msra.mxu0 %v31_v0  ;;  %v28_v4 = vld [vmem:[%s284_s1 + $0x60] sm:$0xff] }
   0x3   :  { %145 = vmatprep.subr.mxu0 %v203_v1 }
   0x4   :  { %146 = vmatpush3.msra.mxu0 %v30_v2 }
   0x5   :  { %147 = vmatprep.subr.mxu0 %v203_v1 }
   0x6   :  { %148 = vmatpush3.msra.mxu0 %v29_v3 }
   0x7   :  { %8 = vsyncpa [#allocation3], 0  ;;  %149 = vmatprep.subr.mxu0 %v203_v1  ;;  %v27_v5 = vld [vmem:[%s284_s1 + $0x58] sm:$0xff]  ;;  %v26_v6 = vld [vmem:[%s284_s1 + $0x50] sm:$0xff]  ;;  %s205_s21 = smov [#allocation2]   ;;  %vm109_vm1 = vcmask 97280  }
   0x8   :  { %150 = vmatpush3.msra.mxu0 %v28_v4  ;;  %v25_v7 = vld [vmem:[%s284_s1 + $0x48] sm:$0xff]  ;;  %v24_v8 = vld [vmem:[%s284_s1 + $0x40] sm:$0xff]  ;;  %v23_v9 = vld [vmem:[%s284_s1 + $0x38] sm:$0xff]  ;;  %s117_s22 = sshll.u32 %s205_s21, 4  ;;  %s118_s22 = int_to_ptr.vmem [resolvable:$true] %s117_s22 }
   0x9   :  { %151 = vmatprep.subr.mxu0 %v203_v1  ;;  %v22_v10 = vld [vmem:[%s284_s1 + $0x30] sm:$0xff]  ;;  %v21_v11 = vld [vmem:[%s284_s1 + $0x28] sm:$0xff]  ;;  %v20_v12 = vld [vmem:[%s284_s1 + $0x20] sm:$0xff]  ;;  %p186_p1 = scmp.lt.s32.totalorder %s118_s22, %s118_s22 }
   0xa   :  { %152 = vmatpush3.msra.mxu0 %v27_v5  ;;  %v19_v13 = vld [vmem:[%s284_s1 + $0x18] sm:$0xff]  ;;  %v18_v14 = vld [vmem:[%s284_s1 + $0x10] sm:$0xff]  ;;  %v17_v15 = vld [vmem:[%s284_s1 + $0x8] sm:$0xff] }
   0xb   :  { %153 = vmatprep.subr.mxu0 %v203_v1  ;;  %v16_v16 = vld [vmem:[%s284_s1] sm:$0xff]  ;;  %s181_s1 = scalar_lea.vmem %s118_s22, 128 }
   0xc   :  { %154 = vmatpush3.msra.mxu0 %v26_v6  ;;  %v15_v17 = vld [vmem:[%s283_s0] sm:$0xff]  ;;  %p182_p0 = scmp.ne.s32.totalorder %s118_s22, %s181_s1  ;;  %p187_p2 = scmp.lt.s32.totalorder %s181_s1, %s181_s1 }
   0xd   :  { %155 = vmatprep.subr.mxu0 %v203_v1  ;;  %v125_v18 = vld [vmem:[%s285_s2] ss:$0 sm:$0xff] }
   0xe   :  { %156 = vmatpush3.msra.mxu0 %v25_v7  ;;  %p188_p3 = por %p187_p2, %p186_p1 }
   0xf   :  { %157 = vmatprep.subr.mxu0 %v203_v1 }
  0x10   :  { %158 = vmatpush3.msra.mxu0 %v24_v8  ;;  %p189_p4 = pnand %p188_p3, %p182_p0 }
  0x11   :  { %159 = vmatprep.subr.mxu0 %v203_v1 }
  0x12   :  { %160 = vmatpush3.msra.mxu0 %v23_v9 }
  0x13   :  { %161 = vmatprep.subr.mxu0 %v203_v1 }
  0x14   :  { %162 = vmatpush3.msra.mxu0 %v22_v10 }
  0x15   :  { %163 = vmatprep.subr.mxu0 %v203_v1 }
  0x16   :  { %164 = vmatpush3.msra.mxu0 %v21_v11 }
  0x17   :  { %165 = vmatprep.subr.mxu0 %v203_v1 }
  0x18   :  { %166 = vmatpush3.msra.mxu0 %v20_v12 }
  0x19   :  { %167 = vmatprep.subr.mxu0 %v203_v1 }
  0x1a   :  { %168 = vmatpush3.msra.mxu0 %v19_v13 }
  0x1b   :  { %169 = vmatprep.subr.mxu0 %v203_v1 }
  0x1c   :  { %170 = vmatpush3.msra.mxu0 %v18_v14 }
  0x1d   :  { %171 = vmatprep.subr.mxu0 %v203_v1 }
  0x1e   :  { %172 = vmatpush3.msra.mxu0 %v17_v15 }
  0x1f   :  { %173 = vmatprep.subr.mxu0 %v203_v1 }
  0x20   :  { %174 = vmatpush3.msra.mxu0 %v16_v16 }
  0x21   :  { %176 = vmatmul.mubr.f32.vlgmr.msra.gmra.mxu0 %v15_v17 }
  0xe1   :  { %v105_v19 = vpop.f32.mrf.mxu0 }
  0xe2   :  { %v106_v20 = vadd.f32 %v125_v18, %v105_v19 }
  0xe3   :  { %v177_v21 = vpop.f32.mrf.mxu0 }
  0xe4   :  { %110 = vst.msk [vmem:[#allocation2] sm:$0xff] %vm109_vm1, %v106_v20 }
  0xe5   :  { %192 = shalt.err (!%p189_p4)
}
  0xe6   :  { %120 = dma.vmem_to_hbm [thread:$0]  %s118_s22, 128, %s286_s3, [#allocation3]  }
  0xe7   :  { %201 = dma.done.wait [#allocation3], 128  }
  0xe8   :  { %202 = vsyncadd [#allocation3], 4294967168 }
  0xe9   :  { %124 = vsyncpa [#allocation3], 1 }

</bundles_post_ra>
